<compile_context>
chip_gen: v5e
topology: v5e:2x2
jax: 0.10.0
libtpu: 0.0.40
codegen_flags: <defaults>
</compile_context>

<pallas_src>
import functools
import math

import jax
import jax.numpy as jnp
from jax.experimental import pallas as pl
from jax.experimental.pallas import tpu as pltpu

EPS = 1e-5
HIDDEN = 200
TILE_K_MAX = 2048       # K-chunk for the first (large-d) layer
TILE_N1_MAX = 1024      # batch tile cap, pass 1
TILE_N23_MAX = 2048     # batch tile cap, passes 2/3


# ----------------------------------------------------------------------------
# helpers
# ----------------------------------------------------------------------------
def _round_up(x, m):
    return ((x + m - 1) // m) * m


def _pad2(a, rows, cols, fill=0.0):
    return jnp.pad(a, ((0, rows - a.shape[0]), (0, cols - a.shape[1])),
                   constant_values=fill)


def _vmem_limit_bytes():
    """Generation-aware scoped-VMEM budget (~3/4 of physical capacity)."""
    cap = None
    try:
        cap = getattr(pltpu.get_tpu_info(), "vmem_capacity_bytes", None)
    except Exception:
        cap = None
    if not cap:
        cap = 64 * 1024 * 1024        # conservative fallback (v7x per-TC)
    return int(cap) * 3 // 4


def _fit_pow2_tile(n_rows, bytes_per_row, budget_bytes, cap):
    """Largest power-of-two batch tile (>=8) that fits the VMEM budget, does
    not exceed `cap`, and is not absurdly larger than the real batch."""
    limit = min(cap, max(8, pl.next_power_of_2(max(int(n_rows), 1))))
    t = 8
    while t * 2 <= limit and (t * 2) * bytes_per_row <= budget_bytes:
        t *= 2
    return t


def _bn_scale_shift(stats, gamma, beta, n_rows):
    """stats: (2, F) [col_sum; col_sum_sq]; gamma/beta: (1, F).
    Returns (2, F) [scale; shift] so that bn(x) = x*scale + shift."""
    mean = stats[0:1, :] / n_rows
    var = jnp.maximum(stats[1:2, :] / n_rows - mean * mean, 0.0)
    scale = gamma * jax.lax.rsqrt(var + EPS)
    shift = beta - mean * scale
    return jnp.concatenate([scale, shift], axis=0)


# ----------------------------------------------------------------------------
# kernels
# ----------------------------------------------------------------------------
def _linear_stats_kernel(x_ref, w_ref, h_ref, stats_ref, acc_ref):
    """h1 = x @ w1 (bf16 operands, f32 K-accumulation); at the last K chunk
    write the bf16 activation tile and the per-tile BN column stats."""
    k = pl.program_id(1)

    @pl.when(k == 0)
    def _():
        acc_ref[...] = jnp.zeros_like(acc_ref)

    acc_ref[...] += jnp.dot(x_ref[...], w_ref[...],
                            preferred_element_type=jnp.float32)

    @pl.when(k == pl.num_programs(1) - 1)
    def _():
        h = acc_ref[...]                                   # f32 (tile_n, Hp)
        h_ref[...] = h.astype(h_ref.dtype)                 # bf16 writeback
        stats_ref[...] = jnp.concatenate(
            [jnp.sum(h, axis=0, keepdims=True),
             jnp.sum(h * h, axis=0, keepdims=True)],
            axis=0).reshape(stats_ref.shape)


def _bn_relu_linear_stats_kernel(h_ref, ss_ref, w_ref, out_h_ref, stats_ref,
                                 *, n_rows, tile_n, mask_rows):
    """a = relu(h1*scale + shift); h2 = a @ w2; per-tile BN2 column stats."""
    i = pl.program_id(0)
    a = jnp.maximum(h_ref[...].astype(jnp.float32) * ss_ref[0:1, :]
                    + ss_ref[1:2, :], 0.0)
    if mask_rows:
        # zero-padded batch rows must not pollute layer-2 statistics
        row = jax.lax.broadcasted_iota(jnp.int32, (tile_n, 1), 0) + i * tile_n
        a = jnp.where(row < n_rows, a, 0.0)
    h2 = jnp.dot(a.astype(jnp.bfloat16), w_ref[...],
                 preferred_element_type=jnp.float32)
    out_h_ref[...] = h2.astype(out_h_ref.dtype)            # bf16 writeback
    stats_ref[...] = jnp.concatenate(
        [jnp.sum(h2, axis=0, keepdims=True),
         jnp.sum(h2 * h2, axis=0, keepdims=True)],
        axis=0).reshape(stats_ref.shape)


def _bn_relu_linear_bias_kernel(h_ref, ss_ref, w_ref, bias_ref, out_ref):
    """out = relu(h2*scale + shift) @ w3 + bias."""
    a = jnp.maximum(h_ref[...].astype(jnp.float32) * ss_ref[0:1, :]
                    + ss_ref[1:2, :], 0.0)
    out_ref[...] = jnp.dot(a.astype(jnp.bfloat16), w_ref[...],
                           preferred_element_type=jnp.float32) + bias_ref[...]


# ----------------------------------------------------------------------------
# wrapper
# ----------------------------------------------------------------------------
def nonlinear_classifier_forward(feat, params):
    """feat: (N, C, H, W) float32.  params: raw (unpadded) weights, see
    init_params().  Returns (N, num_classes) float32 logits."""
    n = feat.shape[0]
    x = feat.reshape(n, -1).astype(jnp.float32)            # Flatten (glue)
    d = x.shape[1]
    num_classes = params["w3"].shape[1]

    h_pad = _round_up(HIDDEN, 128)                         # 200 -> 256
    c_pad = _round_up(num_classes, 128)                    # lane-dense output

    # --- K (feature-dim) tiling for pass 1 ----------------------------------
    d_pad = _round_up(d, 128)
    tile_k = d_pad if d_pad <= TILE_K_MAX else TILE_K_MAX
    d_pad = _round_up(d_pad, tile_k)
    k_tiles = d_pad // tile_k

    # --- generation-aware batch tiles ---------------------------------------
    vmem_limit = _vmem_limit_bytes()
    budget = vmem_limit * 3 // 5                           # leave headroom
    per_row_1 = 4 * tile_k + 16 * h_pad    # x dbuf bf16 + h1 out dbuf + f32 acc/temps
    w1_block = 2 * tile_k * h_pad * 2      # double-buffered bf16 w1 chunk
    tile_n1 = _fit_pow2_tile(n, per_row_1,
                             max(budget - w1_block, 8 * per_row_1),
                             TILE_N1_MAX)
    per_row_23 = 24 * h_pad + 8 * c_pad
    tile_n23 = _fit_pow2_tile(n, per_row_23, budget, TILE_N23_MAX)

    n_pad = _round_up(n, max(tile_n1, tile_n23))           # both tiles divide
    n_tiles1 = n_pad // tile_n1
    n_tiles23 = n_pad // tile_n23

    # --- zero-padded operands (padding columns stay exactly 0) --------------
    x = jnp.pad(x, ((0, n_pad - n), (0, d_pad - d))).astype(jnp.bfloat16)
    w1 = _pad2(params["w1"], d_pad, h_pad).astype(jnp.bfloat16)
    w2 = _pad2(params["w2"], h_pad, h_pad).astype(jnp.bfloat16)
    w3 = _pad2(params["w3"], h_pad, c_pad).astype(jnp.bfloat16)
    g1 = _pad2(params["g1"], 1, h_pad, 0.0)
    b1 = _pad2(params["b1"], 1, h_pad, 0.0)
    g2 = _pad2(params["g2"], 1, h_pad, 0.0)
    b2 = _pad2(params["b2"], 1, h_pad, 0.0)
    bias3 = _pad2(params["bias3"], 1, c_pad, 0.0)

    ss_spec = pl.BlockSpec((2, h_pad), lambda i: (0, 0))

    # ---- pass 1: h1 = x @ w1 (K-tiled), per-tile BN1 stats ------------------
    h1, pstats1 = pl.pallas_call(
        _linear_stats_kernel,
        grid=(n_tiles1, k_tiles),
        in_specs=[pl.BlockSpec((tile_n1, tile_k), lambda i, k: (i, k)),
                  pl.BlockSpec((tile_k, h_pad), lambda i, k: (k, 0))],
        out_specs=[pl.BlockSpec((tile_n1, h_pad), lambda i, k: (i, 0)),
                   pl.BlockSpec((1, 2, h_pad), lambda i, k: (i, 0, 0))],
        out_shape=[jax.ShapeDtypeStruct((n_pad, h_pad), jnp.bfloat16),
                   jax.ShapeDtypeStruct((n_tiles1, 2, h_pad), jnp.float32)],
        scratch_shapes=[pltpu.VMEM((tile_n1, h_pad), jnp.float32)],
        compiler_params=pltpu.CompilerParams(
            dimension_semantics=("parallel", "arbitrary"),
            vmem_limit_bytes=vmem_limit),
        cost_estimate=pl.CostEstimate(
            flops=2 * n_pad * d_pad * h_pad, transcendentals=0,
            bytes_accessed=n_pad * d_pad * 2 + d_pad * h_pad * 2
                           + n_pad * h_pad * 2 + n_tiles1 * 2 * h_pad * 4),
    )(x, w1)

    # BN1 affine fold (tiny XLA op): stats -> (scale, shift)
    ss1 = _bn_scale_shift(jnp.sum(pstats1, axis=0), g1, b1, n)

    # ---- pass 2: a1 = relu(bn1(h1)); h2 = a1 @ w2; per-tile BN2 stats -------
    k2 = functools.partial(_bn_relu_linear_stats_kernel,
                           n_rows=n, tile_n=tile_n23, mask_rows=(n_pad != n))
    h2, pstats2 = pl.pallas_call(
        k2,
        grid=(n_tiles23,),
        in_specs=[pl.BlockSpec((tile_n23, h_pad), lambda i: (i, 0)),
                  ss_spec,
                  pl.BlockSpec((h_pad, h_pad), lambda i: (0, 0))],
        out_specs=[pl.BlockSpec((tile_n23, h_pad), lambda i: (i, 0)),
                   pl.BlockSpec((1, 2, h_pad), lambda i: (i, 0, 0))],
        out_shape=[jax.ShapeDtypeStruct((n_pad, h_pad), jnp.bfloat16),
                   jax.ShapeDtypeStruct((n_tiles23, 2, h_pad), jnp.float32)],
        compiler_params=pltpu.CompilerParams(
            dimension_semantics=("parallel",),
            vmem_limit_bytes=vmem_limit),
        cost_estimate=pl.CostEstimate(
            flops=2 * n_pad * h_pad * h_pad, transcendentals=0,
            bytes_accessed=2 * n_pad * h_pad * 2 + h_pad * h_pad * 2
                           + n_tiles23 * 2 * h_pad * 4),
    )(h1, ss1, w2)

    # BN2 affine fold
    ss2 = _bn_scale_shift(jnp.sum(pstats2, axis=0), g2, b2, n)

    # ---- pass 3: out = relu(bn2(h2)) @ w3 + bias (independent tiles) --------
    out = pl.pallas_call(
        _bn_relu_linear_bias_kernel,
        grid=(n_tiles23,),
        in_specs=[pl.BlockSpec((tile_n23, h_pad), lambda i: (i, 0)),
                  ss_spec,
                  pl.BlockSpec((h_pad, c_pad), lambda i: (0, 0)),
                  pl.BlockSpec((1, c_pad), lambda i: (0, 0))],
        out_specs=pl.BlockSpec((tile_n23, c_pad), lambda i: (i, 0)),
        out_shape=jax.ShapeDtypeStruct((n_pad, c_pad), jnp.float32),
        compiler_params=pltpu.CompilerParams(
            dimension_semantics=("parallel",),
            vmem_limit_bytes=vmem_limit),
        cost_estimate=pl.CostEstimate(
            flops=2 * n_pad * h_pad * c_pad, transcendentals=0,
            bytes_accessed=n_pad * h_pad * 2 + h_pad * c_pad * 2
                           + n_pad * c_pad * 4),
    )(h2, ss2, w3, bias3)

    return out[:n, :num_classes]


# ----------------------------------------------------------------------------
# init (mirrors NonLinearClassifier.weight_init) and references
# ----------------------------------------------------------------------------
def init_params(key, in_channels, num_classes):
    """Linear weights ~ N(0, sqrt(2/out_features)); BN gamma=1, beta=0;
    Linear_3 bias = 0.  Weights stored (in, out) so the kernel does x @ W."""
    k1, k2, k3 = jax.random.split(key, 3)
    std12 = math.sqrt(2.0 / HIDDEN)
    std3 = math.sqrt(2.0 / num_classes)
    return {
        "w1": jax.random.normal(k1, (in_channels, HIDDEN), jnp.float32) * std12,
        "g1": jnp.ones((1, HIDDEN), jnp.float32),
        "b1": jnp.zeros((1, HIDDEN), jnp.float32),
        "w2": jax.random.normal(k2, (HIDDEN, HIDDEN), jnp.float32) * std12,
        "g2": jnp.ones((1, HIDDEN), jnp.float32),
        "b2": jnp.zeros((1, HIDDEN), jnp.float32),
        "w3": jax.random.normal(k3, (HIDDEN, num_classes), jnp.float32) * std3,
        "bias3": jnp.zeros((1, num_classes), jnp.float32),
    }


def reference_forward_bf16(feat, params):
    """Pure-JAX reference with the same numerics as the kernels:
    bf16 matmul operands, f32 accumulation, BN stats from the f32 matmul
    result, BN applied to the bf16-rounded (stored) activations."""
    x = feat.reshape(feat.shape[0], -1).astype(jnp.float32)
    n = x.shape[0]

    def mm(a, w):
        return jnp.dot(a.astype(jnp.bfloat16), w.astype(jnp.bfloat16),
                       preferred_element_type=jnp.float32)

    def bn_relu(h_f32, g, b):
        mean = jnp.sum(h_f32, axis=0, keepdims=True) / n
        var = jnp.maximum(jnp.sum(h_f32 * h_f32, axis=0, keepdims=True) / n
                          - mean * mean, 0.0)
        scale = g * jax.lax.rsqrt(var + EPS)
        shift = b - mean * scale
        h_rt = h_f32.astype(jnp.bfloat16).astype(jnp.float32)  # storage round
        return jnp.maximum(h_rt * scale + shift, 0.0)

    h1 = bn_relu(mm(x, params["w1"]), params["g1"], params["b1"])
    h2 = bn_relu(mm(h1, params["w2"]), params["g2"], params["b2"])
    return mm(h2, params["w3"]) + params["bias3"]


def reference_forward_f32(feat, params):
    """Full-f32 reference matching the PyTorch module's training-mode math."""
    x = feat.reshape(feat.shape[0], -1)

    def bn_relu(h, g, b):
        m = jnp.mean(h, axis=0, keepdims=True)
        v = jnp.mean((h - m) ** 2, axis=0, keepdims=True)
        return jnp.maximum((h - m) / jnp.sqrt(v + EPS) * g + b, 0.0)

    h1 = bn_relu(x @ params["w1"], params["g1"], params["b1"])
    h2 = bn_relu(h1 @ params["w2"], params["g2"], params["b2"])
    return h2 @ params["w3"] + params["bias3"]


# ----------------------------------------------------------------------------
if __name__ == "__main__":
    key = jax.random.PRNGKey(0)
    k_feat, k_params = jax.random.split(key)

    # Small shapes: batch=8, feature map 4x4x4 -> in_channels = 64, 4 classes.
    N, C, H, W = 8, 4, 4, 4
    num_classes = 4
    in_channels = C * H * W

    feat = jax.random.normal(k_feat, (N, C, H, W), jnp.float32)
    params = init_params(k_params, in_channels, num_classes)

    out = jax.block_until_ready(nonlinear_classifier_forward(feat, params))
    assert out.shape == (N, num_classes)

    # Tight check against a reference with matched (bf16) numerics.
    ref_bf16 = reference_forward_bf16(feat, params)
    assert jnp.allclose(out, ref_bf16, atol=5e-3, rtol=5e-3), \
        float(jnp.max(jnp.abs(out - ref_bf16)))

    # Loose sanity check against the full-f32 PyTorch-semantics reference.
    ref_f32 = reference_forward_f32(feat, params)
    assert jnp.allclose(out, ref_f32, atol=0.5, rtol=0.1), \
        float(jnp.max(jnp.abs(out - ref_f32)))

    print("KERNEL_OK")
</pallas_src>

<mosaic_0001>
module attributes {stable_mosaic.version = 11 : i64} {
  func.func @_linear_stats_kernel(%arg0: i32, %arg1: i32, %arg2: memref<8x128xbf16, #tpu.memory_space<vmem>>, %arg3: memref<128x256xbf16, #tpu.memory_space<vmem>>, %arg4: memref<8x256xbf16, #tpu.memory_space<vmem>>, %arg5: memref<1x2x256xf32, #tpu.memory_space<vmem>>, %arg6: memref<8x256xf32, #tpu.memory_space<vmem>>) attributes {dimension_semantics = [#tpu.dimension_semantics<parallel>, #tpu.dimension_semantics<arbitrary>], iteration_bounds = array<i64: 1, 1>, scalar_prefetch = 0 : i64, scratch_operands = 1 : i64, tpu.core_type = #tpu.core_type<tc>, window_params = [{transform_indices = @transform_0, window_bounds = array<i64: 8, 128>}, {transform_indices = @transform_1, window_bounds = array<i64: 128, 256>}, {transform_indices = @transform_2, window_bounds = array<i64: 8, 256>}, {transform_indices = @transform_3, window_bounds = array<i64: 1, 2, 256>}]} {
    %c0_i32 = arith.constant 0 : i32
    %0 = arith.cmpi eq, %arg1, %c0_i32 : i32
    %1 = arith.extui %0 : i1 to i32
    %c0_i32_0 = arith.constant 0 : i32
    %2 = arith.cmpi ne, %1, %c0_i32_0 : i32
    scf.if %2 {
      %cst_10 = arith.constant 0.000000e+00 : f32
      %12 = vector.broadcast %cst_10 : f32 to vector<8x256xf32>
      %c0_11 = arith.constant 0 : index
      %c0_12 = arith.constant 0 : index
      %13 = vector.load %arg6[%c0_11, %c0_12] : memref<8x256xf32, #tpu.memory_space<vmem>>, vector<8x256xf32>
      tpu.vector_store %arg6[%c0_11, %c0_12], %12 {strides = array<i32>} : memref<8x256xf32, #tpu.memory_space<vmem>>, vector<8x256xf32>,
    } else {
    }
    %c0 = arith.constant 0 : index
    %c0_1 = arith.constant 0 : index
    %3 = vector.load %arg6[%c0, %c0_1] : memref<8x256xf32, #tpu.memory_space<vmem>>, vector<8x256xf32>
    %c0_2 = arith.constant 0 : index
    %c0_3 = arith.constant 0 : index
    %4 = vector.load %arg2[%c0_2, %c0_3] : memref<8x128xbf16, #tpu.memory_space<vmem>>, vector<8x128xbf16>
    %c0_4 = arith.constant 0 : index
    %c0_5 = arith.constant 0 : index
    %5 = vector.load %arg3[%c0_4, %c0_5] : memref<128x256xbf16, #tpu.memory_space<vmem>>, vector<128x256xbf16>
    %cst = arith.constant dense<0.000000e+00> : vector<8x256xf32>
    %6 = tpu.matmul %4, %5, %cst {dimension_numbers = #tpu.dot_dimension_numbers<[1], [0], [0], [1], [0, 0, 1, 1], [], []>} : vector<8x128xbf16>, vector<128x256xbf16>, vector<8x256xf32> -> vector<8x256xf32>
    %7 = arith.addf %3, %6 : vector<8x256xf32>
    %c0_6 = arith.constant 0 : index
    %c0_7 = arith.constant 0 : index
    %8 = vector.load %arg6[%c0_6, %c0_7] : memref<8x256xf32, #tpu.memory_space<vmem>>, vector<8x256xf32>
    tpu.vector_store %arg6[%c0_6, %c0_7], %7 {strides = array<i32>} : memref<8x256xf32, #tpu.memory_space<vmem>>, vector<8x256xf32>,
    %c0_i32_8 = arith.constant 0 : i32
    %9 = arith.cmpi eq, %arg1, %c0_i32_8 : i32
    %10 = arith.extui %9 : i1 to i32
    %c0_i32_9 = arith.constant 0 : i32
    %11 = arith.cmpi ne, %10, %c0_i32_9 : i32
    scf.if %11 {
      %c0_10 = arith.constant 0 : index
      %c0_11 = arith.constant 0 : index
      %12 = vector.load %arg6[%c0_10, %c0_11] : memref<8x256xf32, #tpu.memory_space<vmem>>, vector<8x256xf32>
      %13 = arith.truncf %12 : vector<8x256xf32> to vector<8x256xbf16>
      %c0_12 = arith.constant 0 : index
      %c0_13 = arith.constant 0 : index
      %14 = vector.load %arg4[%c0_12, %c0_13] : memref<8x256xbf16, #tpu.memory_space<vmem>>, vector<8x256xbf16>
      tpu.vector_store %arg4[%c0_12, %c0_13], %13 {strides = array<i32>} : memref<8x256xbf16, #tpu.memory_space<vmem>>, vector<8x256xbf16>,
      %cst_14 = arith.constant dense<0.000000e+00> : vector<256xf32>
      %15 = vector.multi_reduction <add>, %12, %cst_14 [0] : vector<8x256xf32> to vector<256xf32>
      %16 = vector.shape_cast %15 : vector<256xf32> to vector<1x256xf32>
      %17 = arith.mulf %12, %12 : vector<8x256xf32>
      %cst_15 = arith.constant dense<0.000000e+00> : vector<256xf32>
      %18 = vector.multi_reduction <add>, %17, %cst_15 [0] : vector<8x256xf32> to vector<256xf32>
      %19 = vector.shape_cast %18 : vector<256xf32> to vector<1x256xf32>
      %20 = tpu.concatenate %16, %19 in 0 : vector<1x256xf32>, vector<1x256xf32> -> vector<2x256xf32>
      %21 = vector.shape_cast %20 : vector<2x256xf32> to vector<1x2x256xf32>
      %c0_16 = arith.constant 0 : index
      %c0_17 = arith.constant 0 : index
      %c0_18 = arith.constant 0 : index
      %22 = vector.load %arg5[%c0_16, %c0_17, %c0_18] : memref<1x2x256xf32, #tpu.memory_space<vmem>>, vector<1x2x256xf32>
      tpu.vector_store %arg5[%c0_16, %c0_17, %c0_18], %21 {strides = array<i32>} : memref<1x2x256xf32, #tpu.memory_space<vmem>>, vector<1x2x256xf32>,
    } else {
    }
    return
  }
  func.func @transform_0(%arg0: i32, %arg1: i32) -> (i32, i32) {
    %c0_i32 = arith.constant 0 : i32
    return %arg0, %arg1 : i32, i32
  }
  func.func @transform_1(%arg0: i32, %arg1: i32) -> (i32, i32) {
    %c0_i32 = arith.constant 0 : i32
    %c0_i32_0 = arith.constant 0 : i32
    return %arg1, %c0_i32 : i32, i32
  }
  func.func @transform_2(%arg0: i32, %arg1: i32) -> (i32, i32) {
    %c0_i32 = arith.constant 0 : i32
    %c0_i32_0 = arith.constant 0 : i32
    return %arg0, %c0_i32 : i32, i32
  }
  func.func @transform_3(%arg0: i32, %arg1: i32) -> (i32, i32, i32) {
    %c0_i32 = arith.constant 0 : i32
    %c0_i32_0 = arith.constant 0 : i32
    %c0_i32_1 = arith.constant 0 : i32
    return %arg0, %c0_i32, %c0_i32_0 : i32, i32, i32
  }
}

</mosaic_0001>

<bundles_post_ra>
// kernel: tpu_custom_call.1
= control target key start
LH: loop header
LB: loop body
LE: loop exit
PB: predicated region body
PF: predicated region fallthrough
CT: control target
= control target key end

     0   :  { %9 = vsyncpa [#allocation4], 0  ;;  %s485_s0 = inlined_call_operand.hbm [shape: bf16[8,128], index: 0, kind: input, shape index: {}]   ;;  %s486_s1 = inlined_call_operand.hbm [shape: bf16[128,256], index: 1, kind: input, shape index: {}]   ;;  %s487_s2 = inlined_call_operand.hbm [shape: bf16[8,256], index: 2, kind: output, shape index: {0}]   ;;  %s488_s3 = inlined_call_operand.hbm [shape: f32[1,2,256], index: 3, kind: output, shape index: {1}]  }
   0x1   :  { %10 = vsyncpa [#allocation7], 0 }
   0x2   :  { %11 = vsyncpa [#allocation5], 0 }
   0x3   :  { %12 = vsyncpa [#allocation10], 0  ;;  %s18_s14 = sshll.u32 %s485_s0, 4  ;;  %s447_s15 = smov [#allocation3]   ;;  %s19_s14 = int_to_ptr.hbm [resolvable:$true] %s18_s14 }
   0x4   :  { %s20_s16 = sshll.u32 %s447_s15, 4  ;;  %s28_s19 = sshll.u32 %s486_s1, 4  ;;  %s21_s16 = int_to_ptr.vmem [resolvable:$true] %s20_s16  ;;  %s29_s19 = int_to_ptr.hbm [resolvable:$true] %s28_s19 }
   0x5   :  { %23 = dma.hbm_to_vmem [thread:$0]  %s19_s14, 64, %s21_s16, [#allocation4]  }
   0x6   :  { %s448_s20 = smov [#allocation6]   ;;  %s449_s22 = smov 128  }
   0x7   :  { %s30_s21 = sshll.u32 %s448_s20, 4  ;;  %s450_s23 = smov 8   ;;  %s31_s21 = int_to_ptr.vmem [resolvable:$true] %s30_s21 }
   0x8   :  { %36 = dma.hbm_to_vmem [thread:$0]  %s29_s19, 2048, %s31_s21, [#allocation7], %s449_s22, %s449_s22, %s450_s23  }
   0x9   :  { %439 = dma.done.wait [#allocation4], 64  }
   0xa   :  { %440 = vsyncadd [#allocation4], 4294967232 }
   0xb   :  { %441 = dma.done.wait [#allocation7], 2048  }
   0xc   :  { %442 = vsyncadd [#allocation7], 4294965248  ;;  %v315_v0 = vld [vmem:[#allocation6 + $0x70] sm:$0xf]  ;;  %v336_v1 = vld [vmem:[#allocation6 + $0x74] sm:$0xf0] }
   0xd   :  { %v335_v2 = vld [vmem:[#allocation6 + $0x74] sm:$0xf]  ;;  %v316_v3 = vor.u32 %v336_v1, %v315_v0  ;;  %v317_v4 = vld [vmem:[#allocation6 + $0x78] sm:$0xf0]  ;;  %v307_v5 = vld [vmem:[#allocation6 + $0x60] sm:$0xf] }
   0xe   :  { %v334_v6 = vld [vmem:[#allocation6 + $0x64] sm:$0xf0]  ;;  %v320_v7 = vor.u32 %v335_v2, %v317_v4  ;;  %v333_v8 = vld [vmem:[#allocation6 + $0x64] sm:$0xf]  ;;  %v309_v9 = vld [vmem:[#allocation6 + $0x68] sm:$0xf0] }
   0xf   :  { %150 = vmatpush.bf16.msra.mxu0 %v316_v3  ;;  %v308_v10 = vor.u32 %v334_v6, %v307_v5  ;;  %v312_v11 = vor.u32 %v333_v8, %v309_v9  ;;  %v299_v12 = vld [vmem:[#allocation6 + $0x50] sm:$0xf]  ;;  %v332_v13 = vld [vmem:[#allocation6 + $0x54] sm:$0xf0]  ;;  %v331_v14 = vld [vmem:[#allocation6 + $0x54] sm:$0xf] }
  0x10   :  { %163 = vmatpush.bf16.msra.mxu1 %v320_v7  ;;  %v301_v15 = vld [vmem:[#allocation6 + $0x58] sm:$0xf0]  ;;  %v300_v16 = vor.u32 %v332_v13, %v299_v12  ;;  %v291_v18 = vld [vmem:[#allocation6 + $0x40] sm:$0xf]  ;;  %v330_v19 = vld [vmem:[#allocation6 + $0x44] sm:$0xf0] }
  0x11   :  { %v304_v17 = vor.u32 %v331_v14, %v301_v15  ;;  %v329_v20 = vld [vmem:[#allocation6 + $0x44] sm:$0xf]  ;;  %v293_v21 = vld [vmem:[#allocation6 + $0x48] sm:$0xf0]  ;;  %v292_v22 = vor.u32 %v330_v19, %v291_v18  ;;  %v283_v24 = vld [vmem:[#allocation6 + $0x30] sm:$0xf] }
  0x12   :  { %v296_v23 = vor.u32 %v329_v20, %v293_v21  ;;  %v328_v25 = vld [vmem:[#allocation6 + $0x34] sm:$0xf0]  ;;  %v327_v26 = vld [vmem:[#allocation6 + $0x34] sm:$0xf]  ;;  %v285_v27 = vld [vmem:[#allocation6 + $0x38] sm:$0xf0] }
  0x13   :  { %151 = vmatpush.bf16.msra.mxu0 %v308_v10  ;;  %v284_v28 = vor.u32 %v328_v25, %v283_v24  ;;  %v288_v29 = vor.u32 %v327_v26, %v285_v27  ;;  %v275_v30 = vld [vmem:[#allocation6 + $0x20] sm:$0xf]  ;;  %v326_v31 = vld [vmem:[#allocation6 + $0x24] sm:$0xf0]  ;;  %v325_v32 = vld [vmem:[#allocation6 + $0x24] sm:$0xf] }
  0x14   :  { %164 = vmatpush.bf16.msra.mxu1 %v312_v11  ;;  %v277_v33 = vld [vmem:[#allocation6 + $0x28] sm:$0xf0]  ;;  %v276_v34 = vor.u32 %v326_v31, %v275_v30  ;;  %v267_v36 = vld [vmem:[#allocation6 + $0x10] sm:$0xf]  ;;  %v324_v37 = vld [vmem:[#allocation6 + $0x14] sm:$0xf0] }
  0x15   :  { %v280_v35 = vor.u32 %v325_v32, %v277_v33  ;;  %v323_v38 = vld [vmem:[#allocation6 + $0x14] sm:$0xf]  ;;  %v269_v39 = vld [vmem:[#allocation6 + $0x18] sm:$0xf0]  ;;  %v268_v40 = vor.u32 %v324_v37, %v267_v36  ;;  %v259_v42 = vld [vmem:[#allocation6] sm:$0xf] }
  0x16   :  { %v272_v41 = vor.u32 %v323_v38, %v269_v39  ;;  %v322_v43 = vld [vmem:[#allocation6 + $0x4] sm:$0xf0]  ;;  %v321_v44 = vld [vmem:[#allocation6 + $0x4] sm:$0xf]  ;;  %v261_v45 = vld [vmem:[#allocation6 + $0x8] sm:$0xf0] }
  0x17   :  { %152 = vmatpush.bf16.msra.mxu0 %v300_v16  ;;  %v260_v46 = vor.u32 %v322_v43, %v259_v42  ;;  %v264_v47 = vor.u32 %v321_v44, %v261_v45  ;;  %v53_v48 = vld [vmem:[#allocation3] sm:$0xf]  ;;  %s451_s0 = smov [#allocation8]   ;;  %s230_s26 = sshll.u32 %s487_s2, 4  ;;  %vm213_vm0 = vcmask 1040384   ;;  %vm219_vm1 = vcmask 1041408   ;;  %s231_s26 = int_to_ptr.hbm [resolvable:$true] %s230_s26 }
  0x18   :  { %165 = vmatpush.bf16.msra.mxu1 %v304_v17  ;;  %s228_s1 = sshll.u32 %s451_s0, 4  ;;  %s452_s2 = smov [#allocation9]   ;;  %s229_s1 = int_to_ptr.vmem [resolvable:$true] %s228_s1 }
  0x19   :  { %s239_s27 = sshll.u32 %s452_s2, 4  ;;  %s241_s30 = sshll.u32 %s488_s3, 4  ;;  %s240_s27 = int_to_ptr.vmem [resolvable:$true] %s239_s27  ;;  %s242_s30 = int_to_ptr.hbm [resolvable:$true] %s241_s30 }
  0x1b   :  { %153 = vmatpush.bf16.msra.mxu0 %v292_v22 }
  0x1c   :  { %166 = vmatpush.bf16.msra.mxu1 %v296_v23 }
  0x1f   :  { %154 = vmatpush.bf16.msra.mxu0 %v284_v28 }
  0x20   :  { %167 = vmatpush.bf16.msra.mxu1 %v288_v29 }
  0x23   :  { %155 = vmatpush.bf16.msra.mxu0 %v276_v34 }
  0x24   :  { %168 = vmatpush.bf16.msra.mxu1 %v280_v35 }
  0x27   :  { %156 = vmatpush.bf16.msra.mxu0 %v268_v40 }
  0x28   :  { %169 = vmatpush.bf16.msra.mxu1 %v272_v41 }
  0x2b   :  { %157 = vmatpush.bf16.msra.mxu0 %v260_v46 }
  0x2c   :  { %170 = vmatpush.bf16.msra.mxu1 %v264_v47 }
  0x2e   :  { %158 = vmatmul.bf16.vlgmr.msra.gmra.mxu0 %v53_v48 }
  0x2f   :  { %171 = vmatmul.bf16.vlgmr.msra.gmra.mxu1 %v53_v48 }
  0xab   :  { %v159_v49 = vpop.f32.mrf.mxu0 }
  0xac   :  { %v187_v50 = vrot.slane %v159_v49, 4  ;;  %v199_v51 = vmul.f32 %v159_v49, %v159_v49  ;;  %v172_v52 = vpop.f32.mrf.mxu1 }
  0xad   :  { %v193_v53 = vrot.slane %v172_v52, 4  ;;  %v200_v54 = vmul.f32 %v172_v52, %v172_v52  ;;  %v185_v55 = vpack.c.bf16 %v172_v52, %v159_v49 }
  0xae   :  { %v188_v56 = vadd.f32 %v187_v50, %v159_v49  ;;  %v201_v57 = vrot.slane %v199_v51, 4 }
  0xaf   :  { %v194_v58 = vadd.f32 %v193_v53, %v172_v52  ;;  %v207_v59 = vrot.slane %v200_v54, 4  ;;  %186 = vst [vmem:[#allocation8] sm:$0xff] %v185_v55 }
  0xb0   :  { %v189_v60 = vrot.slane %v188_v56, 2  ;;  %v202_v61 = vadd.f32 %v201_v57, %v199_v51  ;;  %233 = dma.vmem_to_hbm [thread:$0]  %s229_s1, 128, %s231_s26, [#allocation5]  }
  0xb1   :  { %v195_v62 = vrot.slane %v194_v58, 2  ;;  %v208_v63 = vadd.f32 %v207_v59, %v200_v54 }
  0xb2   :  { %v203_v0 = vrot.slane %v202_v61, 2  ;;  %v190_v1 = vadd.f32 %v189_v60, %v188_v56 }
  0xb3   :  { %v196_v2 = vadd.f32 %v195_v62, %v194_v58  ;;  %v209_v3 = vrot.slane %v208_v63, 2  ;;  %v161_v4 = vpop.f32.mrf.mxu0 }
  0xb4   :  { %v204_v5 = vadd.f32 %v203_v0, %v202_v61  ;;  %v174_v6 = vpop.f32.mrf.mxu1  ;;  %v191_v10 = vrot.slane %v190_v1, 1 }
  0xb5   :  { %v197_v7 = vrot.slane %v196_v2, 1  ;;  %v210_v8 = vadd.f32 %v209_v3, %v208_v63 }
  0xb6   :  { %v205_v9 = vrot.slane %v204_v5, 1  ;;  %v192_v15 = vadd.f32 %v191_v10, %v190_v1 }
  0xb7   :  { %v211_v11 = vrot.slane %v210_v8, 1  ;;  %v198_v12 = vadd.f32 %v197_v7, %v196_v2 }
  0xb8   :  { %v206_v14 = vadd.f32 %v205_v9, %v204_v5 }
  0xb9   :  { %v212_v13 = vadd.f32 %v211_v11, %v210_v8 }
  0xba   :  { %v214_v18 = vsel %vm213_vm0, %v192_v15, %v206_v14 }
  0xbb   :  { %v215_v16 = vsel %vm213_vm0, %v198_v12, %v212_v13 }
  0xbc   :  { %v218_v17 = vrot.slane %v215_v16, 6 }
  0xbe   :  { %v220_v19 = vsel %vm219_vm1, %v214_v18, %v218_v17 }
  0xbf   :  { %222 = vst [vmem:[#allocation9] sm:$0xf] %v220_v19 }
  0xc0   :  { %244 = dma.vmem_to_hbm [thread:$0]  %s240_s27, 64, %s242_s30, [#allocation10]  }
  0xc1   :  { %443 = dma.done.wait [#allocation5], 128  }
  0xc2   :  { %444 = vsyncadd [#allocation5], 4294967168 }
  0xc3   :  { %445 = dma.done.wait [#allocation10], 64  }
  0xc4   :  { %446 = vsyncadd [#allocation10], 4294967232 }
  0xc5   :  { %253 = vsyncpa [#allocation4], 1 }
  0xc6   :  { %254 = vsyncpa [#allocation7], 1 }
  0xc7   :  { %255 = vsyncpa [#allocation5], 1 }
  0xc8   :  { %256 = vsyncpa [#allocation10], 1 }

</bundles_post_ra>
